<compile_context>
chip_gen: v7x
topology: tpu7x:2x2x1
jax: 0.10.0
libtpu: 0.0.40
codegen_flags: <defaults>
</compile_context>

<pallas_src>
import math
import jax
import jax.numpy as jnp
from jax.experimental import pallas as pl
from jax.experimental.pallas import tpu as pltpu

# ----------------------- module hyper-parameters (small) -----------------------
DIM = 64                                   # dim
MULTIPLE_OF = 32                           # multiple_of
HIDDEN_IN = 4 * DIM                        # hidden_dim ctor arg (4*dim in the model)
_h = int(2 * HIDDEN_IN / 3)
HIDDEN = MULTIPLE_OF * ((_h + MULTIPLE_OF - 1) // MULTIPLE_OF)   # 192
LANE = 128
H_PAD = ((HIDDEN + LANE - 1) // LANE) * LANE                     # 256 (lane-aligned)
BATCH = 2
SEQLEN = 12


# ---------------------------------- kernel -------------------------------------
def ffn_kernel(x_ref, w13_ref, w2_ref, o_ref):
    """Fused SwiGLU FFN: o = (silu(x @ w1) * (x @ w3)) @ w2, single VMEM block."""
    x = x_ref[...]                                                    # [M, DIM]
    # gate & up projections in one lane-dense MXU push: [M, 2*H_PAD] (512 lanes)
    h = jnp.dot(x, w13_ref[...], preferred_element_type=jnp.float32)
    gate = h[:, :H_PAD]                                               # tile-aligned split
    up = h[:, H_PAD:]
    act = gate * jax.nn.sigmoid(gate) * up                            # SiLU(gate) * up
    o_ref[...] = jnp.dot(act, w2_ref[...], preferred_element_type=jnp.float32)


# ------------------------------- wrapper ----------------------------------------
def feed_forward(x, w1, w2, w3):
    """x: [..., DIM]; w1/w3: [DIM, HIDDEN]; w2: [HIDDEN, DIM]  (x @ W layout)."""
    lead = x.shape[:-1]
    m = int(math.prod(lead)) if lead else 1
    x2d = x.reshape(m, DIM)

    # Zero-pad hidden to a lane multiple and fuse w1/w3 -> [DIM, 2*H_PAD].
    pad = H_PAD - HIDDEN
    w1p = jnp.pad(w1, ((0, 0), (0, pad)))
    w3p = jnp.pad(w3, ((0, 0), (0, pad)))
    w13 = jnp.concatenate([w1p, w3p], axis=1)                         # [DIM, 2*H_PAD]
    w2p = jnp.pad(w2, ((0, pad), (0, 0)))                             # [H_PAD, DIM]

    out = pl.pallas_call(
        ffn_kernel,
        out_shape=jax.ShapeDtypeStruct((m, DIM), jnp.float32),
        in_specs=[pl.BlockSpec((m, DIM), lambda: (0, 0)),
                  pl.BlockSpec((DIM, 2 * H_PAD), lambda: (0, 0)),
                  pl.BlockSpec((H_PAD, DIM), lambda: (0, 0))],
        out_specs=pl.BlockSpec((m, DIM), lambda: (0, 0)),
        compiler_params=pltpu.CompilerParams(vmem_limit_bytes=4 * 1024 * 1024),
    )(x2d, w13, w2p)
    return out.reshape(*lead, DIM)


forward = jax.jit(feed_forward)


# --------------------------------- main ------------------------------------------
if __name__ == "__main__":
    key = jax.random.PRNGKey(0)
    kx, k1, k2, k3 = jax.random.split(key, 4)

    x = jax.random.normal(kx, (BATCH, SEQLEN, DIM), dtype=jnp.float32)
    # Weights stored as [in, out] (transpose of the PyTorch Linear layout).
    w1 = 0.02 * jax.random.normal(k1, (DIM, HIDDEN), dtype=jnp.float32)
    w2 = 0.02 * jax.random.normal(k2, (HIDDEN, DIM), dtype=jnp.float32)
    w3 = 0.02 * jax.random.normal(k3, (DIM, HIDDEN), dtype=jnp.float32)

    out = forward(x, w1, w2, w3)
    jax.block_until_ready(out)

    # Pure-JAX reference of the PyTorch forward: w2(silu(w1(x)) * w3(x))
    g = x @ w1
    ref = (g * jax.nn.sigmoid(g) * (x @ w3)) @ w2
    assert out.shape == (BATCH, SEQLEN, DIM)
    assert jnp.allclose(out, ref, rtol=1e-5, atol=1e-5), "mismatch vs reference"

    print("KERNEL_OK")
</pallas_src>

<mosaic_0001>
module attributes {stable_mosaic.version = 11 : i64} {
  func.func @ffn_kernel(%arg0: memref<24x64xf32, #tpu.memory_space<vmem>>, %arg1: memref<64x512xf32, #tpu.memory_space<vmem>>, %arg2: memref<256x64xf32, #tpu.memory_space<vmem>>, %arg3: memref<24x64xf32, #tpu.memory_space<vmem>>) attributes {dimension_semantics = [], scalar_prefetch = 0 : i64, scratch_operands = 0 : i64, tpu.core_type = #tpu.core_type<tc>} {
    %c0 = arith.constant 0 : index
    %c0_0 = arith.constant 0 : index
    %0 = vector.load %arg0[%c0, %c0_0] : memref<24x64xf32, #tpu.memory_space<vmem>>, vector<24x64xf32>
    %c0_1 = arith.constant 0 : index
    %c0_2 = arith.constant 0 : index
    %1 = vector.load %arg1[%c0_1, %c0_2] : memref<64x512xf32, #tpu.memory_space<vmem>>, vector<64x512xf32>
    %cst = arith.constant dense<0.000000e+00> : vector<24x512xf32>
    %2 = tpu.matmul %0, %1, %cst {dimension_numbers = #tpu.dot_dimension_numbers<[1], [0], [0], [1], [0, 0, 1, 1], [], []>} : vector<24x64xf32>, vector<64x512xf32>, vector<24x512xf32> -> vector<24x512xf32>
    %3 = vector.extract_strided_slice %2 {offsets = [0, 0], sizes = [24, 256], strides = [1, 1]} : vector<24x512xf32> to vector<24x256xf32>
    %4 = vector.extract_strided_slice %2 {offsets = [0, 256], sizes = [24, 256], strides = [1, 1]} : vector<24x512xf32> to vector<24x256xf32>
    %5 = arith.negf %3 : vector<24x256xf32>
    %6 = math.exp %5 : vector<24x256xf32>
    %cst_3 = arith.constant 1.000000e+00 : f32
    %7 = vector.broadcast %cst_3 : f32 to vector<24x256xf32>
    %8 = arith.addf %7, %6 : vector<24x256xf32>
    %9 = arith.divf %7, %8 : vector<24x256xf32>
    %10 = arith.mulf %3, %9 : vector<24x256xf32>
    %11 = arith.mulf %10, %4 : vector<24x256xf32>
    %c0_4 = arith.constant 0 : index
    %c0_5 = arith.constant 0 : index
    %12 = vector.load %arg2[%c0_4, %c0_5] : memref<256x64xf32, #tpu.memory_space<vmem>>, vector<256x64xf32>
    %cst_6 = arith.constant dense<0.000000e+00> : vector<24x64xf32>
    %13 = tpu.matmul %11, %12, %cst_6 {dimension_numbers = #tpu.dot_dimension_numbers<[1], [0], [0], [1], [0, 0, 1, 1], [], []>} : vector<24x256xf32>, vector<256x64xf32>, vector<24x64xf32> -> vector<24x64xf32>
    %c0_7 = arith.constant 0 : index
    %c0_8 = arith.constant 0 : index
    %14 = vector.load %arg3[%c0_7, %c0_8] : memref<24x64xf32, #tpu.memory_space<vmem>>, vector<24x64xf32>
    tpu.vector_store %arg3[%c0_7, %c0_8], %13 {strides = array<i32>} : memref<24x64xf32, #tpu.memory_space<vmem>>, vector<24x64xf32>,
    return
  }
}

</mosaic_0001>

<bundles_post_ra>
// kernel: feed_forward.1
= control target key start
LH: loop header
LB: loop body
LE: loop exit
PB: predicated region body
PF: predicated region fallthrough
CT: control target
= control target key end

     0   :  { %v534_v3 = vmov 0.0   ;;  %vm49_vm0 = vcmask 523264   ;;  %s780_s1 = inlined_call_operand.vmem [shape: f32[64,512], index: 1, kind: input, shape index: {}]   ;;  %s781_s0 = inlined_call_operand.vmem [shape: f32[24,64], index: 0, kind: input, shape index: {}]   ;;  %s782_s2 = inlined_call_operand.vmem [shape: f32[256,64], index: 2, kind: input, shape index: {}]   ;;  %s783_s3 = inlined_call_operand.vmem [shape: f32[24,64], index: 3, kind: output, shape index: {}]  }
   0x1   :  { %v18_v0 = vld [vmem:[%s780_s1 + $0x8] sm:$0xff]  ;;  %v17_v2 = vld [vmem:[%s780_s1] sm:$0xff]  ;;  %123 = vmatprep.mubr.f32.mxu1 %v534_v3  ;;  %v20_v24 = vld [vmem:[%s780_s1 + $0x18] sm:$0xff] }
   0x2   :  { %v22_v1 = vld [vmem:[%s780_s1 + $0x28] sm:$0xff]  ;;  %v21_v5 = vld [vmem:[%s780_s1 + $0x20] sm:$0xff]  ;;  %v24_v25 = vld [vmem:[%s780_s1 + $0x38] sm:$0xff] }
   0x3   :  { %v445_v4 = vpack.c.bf16 %v22_v1, %v18_v0  ;;  %v26_v6 = vld [vmem:[%s780_s1 + $0x48] sm:$0xff]  ;;  %v447_v8 = vpack.c.bf16 %v21_v5, %v17_v2  ;;  %v25_v10 = vld [vmem:[%s780_s1 + $0x40] sm:$0xff]  ;;  %v461_v27 = vpack.c.bf16 %v24_v25, %v20_v24  ;;  %v19_v28 = vld [vmem:[%s780_s1 + $0x10] sm:$0xff] }
   0x4   :  { %v30_v7 = vld [vmem:[%s780_s1 + $0x68] sm:$0xff]  ;;  %v29_v11 = vld [vmem:[%s780_s1 + $0x60] sm:$0xff]  ;;  %v23_v29 = vld [vmem:[%s780_s1 + $0x30] sm:$0xff] }
   0x5   :  { %v449_v9 = vpack.c.bf16 %v30_v7, %v26_v6  ;;  %v34_v12 = vld [vmem:[%s780_s1 + $0x88] sm:$0xff]  ;;  %446 = vmatprep.subr.bf16.mxu1 %v445_v4  ;;  %v451_v14 = vpack.c.bf16 %v29_v11, %v25_v10  ;;  %v33_v16 = vld [vmem:[%s780_s1 + $0x80] sm:$0xff]  ;;  %v28_v30 = vld [vmem:[%s780_s1 + $0x58] sm:$0xff]  ;;  %v463_v33 = vpack.c.bf16 %v23_v29, %v19_v28 }
   0x6   :  { %v38_v13 = vld [vmem:[%s780_s1 + $0xa8] sm:$0xff]  ;;  %448 = vmatpush1.bf16.msra.mxu1 %v447_v8  ;;  %v37_v17 = vld [vmem:[%s780_s1 + $0xa0] sm:$0xff]  ;;  %v32_v31 = vld [vmem:[%s780_s1 + $0x78] sm:$0xff] }
   0x7   :  { %450 = vmatprep.subr.bf16.mxu1 %v449_v9  ;;  %v453_v15 = vpack.c.bf16 %v38_v13, %v34_v12  ;;  %v42_v18 = vld [vmem:[%s780_s1 + $0xc8] sm:$0xff]  ;;  %v455_v20 = vpack.c.bf16 %v37_v17, %v33_v16  ;;  %v41_v22 = vld [vmem:[%s780_s1 + $0xc0] sm:$0xff]  ;;  %v465_v34 = vpack.c.bf16 %v32_v31, %v28_v30  ;;  %v27_v35 = vld [vmem:[%s780_s1 + $0x50] sm:$0xff] }
   0x8   :  { %v46_v19 = vld [vmem:[%s780_s1 + $0xe8] sm:$0xff]  ;;  %v45_v23 = vld [vmem:[%s780_s1 + $0xe0] sm:$0xff]  ;;  %v31_v36 = vld [vmem:[%s780_s1 + $0x70] sm:$0xff] }
   0x9   :  { %v457_v21 = vpack.c.bf16 %v46_v19, %v42_v18  ;;  %v459_v26 = vpack.c.bf16 %v45_v23, %v41_v22  ;;  %v14_v32 = vld [vmem:[%s781_s0] sm:$0xff]  ;;  %v36_v37 = vld [vmem:[%s780_s1 + $0x98] sm:$0xff]  ;;  %v15_v39 = vld [vmem:[%s781_s0 + $0x8] sm:$0xff]  ;;  %v467_v40 = vpack.c.bf16 %v31_v36, %v27_v35 }
   0xa   :  { %452 = vmatpush1.bf16.msra.mxu1 %v451_v14  ;;  %v40_v38 = vld [vmem:[%s780_s1 + $0xb8] sm:$0xff]  ;;  %v35_v42 = vld [vmem:[%s780_s1 + $0x90] sm:$0xff]  ;;  %v289_v52 = vld [vmem:[%s782_s2 + $0x80] sm:$0xff] }
   0xb   :  { %454 = vmatprep.subr.bf16.mxu1 %v453_v15  ;;  %v469_v41 = vpack.c.bf16 %v40_v38, %v36_v37  ;;  %v39_v43 = vld [vmem:[%s780_s1 + $0xb0] sm:$0xff]  ;;  %v44_v44 = vld [vmem:[%s780_s1 + $0xd8] sm:$0xff]  ;;  %v290_v53 = vld [vmem:[%s782_s2 + $0x88] sm:$0xff] }
   0xc   :  { %v48_v45 = vld [vmem:[%s780_s1 + $0xf8] sm:$0xff]  ;;  %v16_v46 = vld [vmem:[%s781_s0 + $0x10] sm:$0xff]  ;;  %v471_v47 = vpack.c.bf16 %v39_v43, %v35_v42  ;;  %v477_v54 = vpack.c.bf16 %v290_v53, %v289_v52  ;;  %v273_v55 = vld [vmem:[%s782_s2] sm:$0xff] }
   0xd   :  { %v473_v48 = vpack.c.bf16 %v48_v45, %v44_v44  ;;  %v43_v49 = vld [vmem:[%s780_s1 + $0xd0] sm:$0xff]  ;;  %v274_v56 = vld [vmem:[%s782_s2 + $0x8] sm:$0xff]  ;;  %v292_v59 = vld [vmem:[%s782_s2 + $0x98] sm:$0xff] }
   0xe   :  { %456 = vmatpush1.bf16.msra.mxu1 %v455_v20  ;;  %v47_v50 = vld [vmem:[%s780_s1 + $0xf0] sm:$0xff]  ;;  %v479_v57 = vpack.c.bf16 %v274_v56, %v273_v55  ;;  %478 = vmatprep.subr.bf16.mxu0 %v477_v54  ;;  %v276_v62 = vld [vmem:[%s782_s2 + $0x18] sm:$0xff]  ;;  %v293_v0 = vld [vmem:[%s782_s2 + $0xa0] sm:$0xff] }
   0xf   :  { %458 = vmatprep.subr.bf16.mxu1 %v457_v21  ;;  %v475_v51 = vpack.c.bf16 %v47_v50, %v43_v49  ;;  %v291_v58 = vld [vmem:[%s782_s2 + $0x90] sm:$0xff]  ;;  %v294_v1 = vld [vmem:[%s782_s2 + $0xa8] sm:$0xff]  ;;  %v296_v7 = vld [vmem:[%s782_s2 + $0xb8] sm:$0xff] }
  0x10   :  { %480 = vmatpush3.bf16.msra.mxu0 %v479_v57  ;;  %v481_v60 = vpack.c.bf16 %v292_v59, %v291_v58  ;;  %v275_v61 = vld [vmem:[%s782_s2 + $0x10] sm:$0xff]  ;;  %v485_v2 = vpack.c.bf16 %v294_v1, %v293_v0  ;;  %v278_v4 = vld [vmem:[%s782_s2 + $0x28] sm:$0xff]  ;;  %v280_v10 = vld [vmem:[%s782_s2 + $0x38] sm:$0xff] }
  0x11   :  { %v483_v63 = vpack.c.bf16 %v276_v62, %v275_v61  ;;  %v295_v6 = vld [vmem:[%s782_s2 + $0xb0] sm:$0xff]  ;;  %v297_v12 = vld [vmem:[%s782_s2 + $0xc0] sm:$0xff]  ;;  %v298_v13 = vld [vmem:[%s782_s2 + $0xc8] sm:$0xff] }
  0x12   :  { %460 = vmatpush1.bf16.msra.mxu1 %v459_v26  ;;  %482 = vmatprep.subr.bf16.mxu0 %v481_v60  ;;  %v489_v8 = vpack.c.bf16 %v296_v7, %v295_v6  ;;  %v279_v9 = vld [vmem:[%s782_s2 + $0x30] sm:$0xff]  ;;  %v493_v14 = vpack.c.bf16 %v298_v13, %v297_v12  ;;  %v281_v15 = vld [vmem:[%s782_s2 + $0x40] sm:$0xff]  ;;  %v282_v16 = vld [vmem:[%s782_s2 + $0x48] sm:$0xff] }
  0x13   :  { %462 = vmatprep.subr.bf16.mxu1 %v461_v27  ;;  %v491_v11 = vpack.c.bf16 %v280_v10, %v279_v9  ;;  %v495_v17 = vpack.c.bf16 %v282_v16, %v281_v15  ;;  %v299_v18 = vld [vmem:[%s782_s2 + $0xd0] sm:$0xff]  ;;  %v300_v19 = vld [vmem:[%s782_s2 + $0xd8] sm:$0xff]  ;;  %v301_v24 = vld [vmem:[%s782_s2 + $0xe0] sm:$0xff] }
  0x14   :  { %484 = vmatpush3.bf16.msra.mxu0 %v483_v63  ;;  %v497_v20 = vpack.c.bf16 %v300_v19, %v299_v18  ;;  %v283_v21 = vld [vmem:[%s782_s2 + $0x50] sm:$0xff]  ;;  %v284_v22 = vld [vmem:[%s782_s2 + $0x58] sm:$0xff]  ;;  %v302_v25 = vld [vmem:[%s782_s2 + $0xe8] sm:$0xff] }
  0x15   :  { %392 = vmatmul.mubr.msk.f32.vlgmr.msra.gmra.mrb[0].mxu1 %vm49_vm0, %v14_v32  ;;  %486 = vmatprep.subr.bf16.mxu0 %v485_v2  ;;  %v499_v23 = vpack.c.bf16 %v284_v22, %v283_v21  ;;  %v501_v26 = vpack.c.bf16 %v302_v25, %v301_v24  ;;  %v285_v27 = vld [vmem:[%s782_s2 + $0x60] sm:$0xff]  ;;  %v286_v28 = vld [vmem:[%s782_s2 + $0x68] sm:$0xff]  ;;  %v303_v30 = vld [vmem:[%s782_s2 + $0xf0] sm:$0xff] }
  0x16   :  { %129 = vmatprep.mubr.f32.mxu1 %v534_v3  ;;  %464 = vmatpush1.bf16.msra.mxu1 %v463_v33  ;;  %v503_v29 = vpack.c.bf16 %v286_v28, %v285_v27  ;;  %v304_v31 = vld [vmem:[%s782_s2 + $0xf8] sm:$0xff]  ;;  %v287_v33 = vld [vmem:[%s782_s2 + $0x70] sm:$0xff] }
  0x17   :  { %466 = vmatprep.subr.bf16.mxu1 %v465_v34  ;;  %v288_v34 = vld [vmem:[%s782_s2 + $0x78] sm:$0xff] }
  0x18   :  { %v507_v35 = vpack.c.bf16 %v288_v34, %v287_v33 }
  0x19   :  { %393 = vmatmul.mubr.msk.f32.gmra.mrb[2].mxu1 %vm49_vm0, %v15_v39 }
  0x1a   :  { %135 = vmatprep.mubr.f32.mxu1 %v534_v3  ;;  %468 = vmatpush1.bf16.msra.mxu1 %v467_v40 }
  0x1b   :  { %470 = vmatprep.subr.bf16.mxu1 %v469_v41 }
  0x1d   :  { %394 = vmatmul.mubr.msk.f32.gmra.mrb[4].mxu1 %vm49_vm0, %v16_v46 }
  0x1e   :  { %472 = vmatpush1.bf16.msra.mxu1 %v471_v47  ;;  %206 = vmatprep.mubr.f32.mxu1 %v534_v3 }
  0x1f   :  { %474 = vmatprep.subr.bf16.mxu1 %v473_v48 }
  0x22   :  { %476 = vmatpush1.bf16.msra.mxu1 %v475_v51 }
  0x25   :  { %395 = vmatmul.mubr.msk.f32.vlgmr.msra.gmra.mrb[6].mxu1 %vm49_vm0, %v14_v32  ;;  %v505_v32 = vpack.c.bf16 %v304_v31, %v303_v30 }
  0x26   :  { %212 = vmatprep.mubr.f32.mxu1 %v534_v3 }
  0x29   :  { %396 = vmatmul.mubr.msk.f32.gmra.mrb[8].mxu1 %vm49_vm0, %v15_v39 }
  0x2a   :  { %218 = vmatprep.mubr.f32.mxu1 %v534_v3  ;;  %v277_v3 = vld [vmem:[%s782_s2 + $0x20] sm:$0xff] }
  0x2b   :  { %v487_v5 = vpack.c.bf16 %v278_v4, %v277_v3 }
  0x2d   :  { %397 = vmatmul.mubr.msk.f32.gmra.mrb[10].mxu1 %vm49_vm0, %v16_v46  ;;  %488 = vmatpush3.bf16.msra.mxu0 %v487_v5 }
  0x2e   :  { %490 = vmatprep.subr.bf16.mxu0 %v489_v8 }
  0x31   :  { %492 = vmatpush3.bf16.msra.mxu0 %v491_v11 }
  0x32   :  { %494 = vmatprep.subr.bf16.mxu0 %v493_v14 }
  0x35   :  { %496 = vmatpush3.bf16.msra.mxu0 %v495_v17 }
  0x36   :  { %498 = vmatprep.subr.bf16.mxu0 %v497_v20 }
  0x39   :  { %500 = vmatpush3.bf16.msra.mxu0 %v499_v23 }
  0x3a   :  { %502 = vmatprep.subr.bf16.mxu0 %v501_v26 }
  0x3d   :  { %504 = vmatpush3.bf16.msra.mxu0 %v503_v29 }
  0x3e   :  { %506 = vmatprep.subr.bf16.mxu0 %v505_v32 }
  0x41   :  { %508 = vmatpush3.bf16.msra.mxu0 %v507_v35 }
  0xe8   :  { %v125_v36 = vpop.f32.mrb[0].mxu1 }
  0xe9   :  { %v398_v37 = vmul.f32 -1.442695, %v125_v36  ;;  %v127_v38 = vpop.f32.mrb[1].mxu1 }
  0xea   :  { %v399_v39 = vmul.f32 -1.442695, %v127_v38 }
  0xeb   :  { %510 = vpow2.f32 %v398_v37 }
  0xec   :  { %512 = vpow2.f32 %v399_v39  ;;  %v131_v40 = vpop.f32.mrb[2].mxu1 }
  0xed   :  { %v400_v41 = vmul.f32 -1.442695, %v131_v40  ;;  %v133_v42 = vpop.f32.mrb[3].mxu1 }
  0xee   :  { %v401_v43 = vmul.f32 -1.442695, %v133_v42 }
  0xef   :  { %514 = vpow2.f32 %v400_v41 }
  0xf0   :  { %516 = vpow2.f32 %v401_v43  ;;  %v137_v44 = vpop.f32.mrb[4].mxu1 }
  0xf1   :  { %v402_v45 = vmul.f32 -1.442695, %v137_v44  ;;  %v139_v46 = vpop.f32.mrb[5].mxu1 }
  0xf2   :  { %v403_v47 = vmul.f32 -1.442695, %v139_v46 }
  0xf3   :  { %518 = vpow2.f32 %v402_v45 }
  0xf4   :  { %520 = vpow2.f32 %v403_v47 }
  0xf5   :  { %v511_v48 = vpop.eup %510 }
  0xf6   :  { %v513_v49 = vpop.eup %512  ;;  %v243_v50 = vadd.f32 1.0, %v511_v48 }
  0xf7   :  { %v244_v51 = vadd.f32 1.0, %v513_v49 }
  0xf8   :  { %522 = vrcp.f32 %v243_v50  ;;  %v208_v52 = vpop.f32.mrb[6].mxu1 }
  0xf9   :  { %v515_v53 = vpop.eup %514  ;;  %524 = vrcp.f32 %v244_v51  ;;  %v210_v54 = vpop.f32.mrb[7].mxu1 }
  0xfa   :  { %v517_v55 = vpop.eup %516  ;;  %v245_v56 = vadd.f32 1.0, %v515_v53 }
  0xfb   :  { %v246_v57 = vadd.f32 1.0, %v517_v55 }
  0xfc   :  { %526 = vrcp.f32 %v245_v56  ;;  %v214_v58 = vpop.f32.mrb[8].mxu1 }
  0xfd   :  { %v519_v59 = vpop.eup %518  ;;  %528 = vrcp.f32 %v246_v57  ;;  %v216_v60 = vpop.f32.mrb[9].mxu1 }
  0xfe   :  { %v521_v61 = vpop.eup %520  ;;  %v247_v62 = vadd.f32 1.0, %v519_v59 }
  0xff   :  { %v248_v63 = vadd.f32 1.0, %v521_v61 }
 0x100   :  { %530 = vrcp.f32 %v247_v62  ;;  %v220_v0 = vpop.f32.mrb[10].mxu1 }
 0x101   :  { %532 = vrcp.f32 %v248_v63  ;;  %v222_v1 = vpop.f32.mrb[11].mxu1 }
 0x102   :  { %v523_v2 = vpop.eup %522 }
 0x103   :  { %v525_v3 = vpop.eup %524  ;;  %v261_v4 = vmul.f32 %v523_v2, %v125_v36 }
 0x104   :  { %v262_v5 = vmul.f32 %v525_v3, %v127_v38 }
 0x105   :  { %v267_v6 = vmul.f32 %v261_v4, %v208_v52 }
 0x106   :  { %v527_v7 = vpop.eup %526  ;;  %v268_v8 = vmul.f32 %v262_v5, %v210_v54 }
 0x107   :  { %v529_v9 = vpop.eup %528  ;;  %v263_v10 = vmul.f32 %v527_v7, %v131_v40 }
 0x108   :  { %v264_v11 = vmul.f32 %v529_v9, %v133_v42  ;;  %369 = vmatprep.mubr.f32.mxu0 %v268_v8 }
 0x109   :  { %v269_v12 = vmul.f32 %v263_v10, %v214_v58  ;;  %370 = vmatmul.mubr.f32.vlgmr.msra.gmra.mrb[0].mxu0 %v267_v6 }
 0x10a   :  { %v531_v13 = vpop.eup %530  ;;  %v270_v14 = vmul.f32 %v264_v11, %v216_v60 }
 0x10b   :  { %v533_v15 = vpop.eup %532  ;;  %v265_v16 = vmul.f32 %v531_v13, %v137_v44 }
 0x10c   :  { %v266_v17 = vmul.f32 %v533_v15, %v139_v46  ;;  %374 = vmatprep.mubr.f32.mxu0 %v270_v14 }
 0x10d   :  { %v271_v18 = vmul.f32 %v265_v16, %v220_v0  ;;  %375 = vmatmul.mubr.f32.gmra.mrb[2].mxu0 %v269_v12 }
 0x10e   :  { %v272_v19 = vmul.f32 %v266_v17, %v222_v1 }
 0x110   :  { %379 = vmatprep.mubr.f32.mxu0 %v272_v19 }
 0x111   :  { %380 = vmatmul.mubr.f32.gmra.mrb[4].mxu0 %v271_v18 }
 0x1dc   :  { %v436_v20 = vpop.f32.mrb[0].mxu0 }
 0x1dd   :  { %v437_v21 = vpop.f32.mrb[1].mxu0 }
 0x1de   :  { %v438_v22 = vadd.f32 %v437_v21, %v436_v20 }
 0x1e0   :  { %385 = vst.msk [vmem:[%s783_s3] sm:$0xff] %vm49_vm0, %v438_v22  ;;  %v439_v23 = vpop.f32.mrb[2].mxu0 }
 0x1e1   :  { %v440_v24 = vpop.f32.mrb[3].mxu0 }
 0x1e2   :  { %v441_v25 = vadd.f32 %v440_v24, %v439_v23 }
 0x1e4   :  { %386 = vst.msk [vmem:[%s783_s3 + $0x8] sm:$0xff] %vm49_vm0, %v441_v25  ;;  %v442_v26 = vpop.f32.mrb[4].mxu0 }
 0x1e5   :  { %v443_v27 = vpop.f32.mrb[5].mxu0 }
 0x1e6   :  { %v444_v28 = vadd.f32 %v443_v27, %v442_v26 }
 0x1e8   :  { %387 = vst.msk [vmem:[%s783_s3 + $0x10] sm:$0xff] %vm49_vm0, %v444_v28 }

</bundles_post_ra>
